<compile_context>
chip_gen: v7x
topology: tpu7x:2x2x1
jax: 0.10.0
libtpu: 0.0.40
codegen_flags: <defaults>
</compile_context>

<pallas_src>
import functools

import numpy as np
import jax
import jax.numpy as jnp
from jax.experimental import pallas as pl
from jax.experimental.pallas import tpu as pltpu


_HALO = 128  # halo lanes per side; multiple of 128 and must be >= L // 2


# ----------------------------------------------------------------------------
# Deterministic tap construction (mirrors get_radiation_time_filter + periodic
# hann window + .flip(0) from the PyTorch __init__).  Returned as Python floats
# so they can be baked into the kernel as immediates.
# TODO(synk): verify offline against the actual torch buffer (hann periodicity
# / sinc convention cannot be checked in-script without torch).
# ----------------------------------------------------------------------------
def make_lti_radiation_taps(num_zeros: int) -> tuple:
    n = np.arange(-num_zeros, num_zeros + 1, dtype=np.float64)
    safe_n = np.where(n == 0, 1.0, n)
    h = (np.cos(np.pi * n) - np.sinc(n)) / safe_n   # ideal differentiator
    h = np.where(n == 0, 0.0, h)
    L = h.shape[0]
    m = np.arange(L, dtype=np.float64)
    win = 0.5 - 0.5 * np.cos(2.0 * np.pi * m / L)   # torch.hann_window (periodic)
    h = h * win
    h = h[::-1]                                     # .flip(0): conv1d is x-corr
    return tuple(float(v) for v in h.astype(np.float32))


# ----------------------------------------------------------------------------
# Tile / chunk selection helpers.
# ----------------------------------------------------------------------------
def _pick_batch_tile(B: int, cap: int = 128) -> int:
    """Sublane tile: multiple of 8 (<= cap, <= B) minimizing wasted coverage."""
    if B < 8:
        return B
    hi = min((B // 8) * 8, cap)
    best, best_cov = 8, ((B + 7) // 8) * 8
    for d in range(8, hi + 1, 8):
        cov = ((B + d - 1) // d) * d
        if cov <= best_cov:          # prefer the largest tile at equal coverage
            best, best_cov = d, cov
    return best


def _pick_row_chunk(b_tile: int) -> int:
    return 8 if b_tile % 8 == 0 else b_tile


def _pick_col_chunk(t_tile: int, cap: int = 512) -> int:
    """Largest multiple of 128 dividing t_tile, capped (bounds live vregs)."""
    best = 128
    for d in range(128, min(t_tile, cap) + 1, 128):
        if t_tile % d == 0:
            best = d
    return best


# ----------------------------------------------------------------------------
# Pallas kernel: FIR cross-correlation on one (B_tile, T_tile) output tile.
# ----------------------------------------------------------------------------
def _fir_kernel(left_ref, x_ref, right_ref, o_ref, slab_ref, *,
                taps, pad, t_total, main_ragged, row_chunk, col_chunk):
    it = pl.program_id(1)
    b_tile, t_tile = o_ref.shape
    t0 = it * t_tile

    lane_h = jax.lax.broadcasted_iota(jnp.int32, (1, _HALO), 1)

    # Conv zero-padding semantics: positions outside [0, t_total) are zero.
    # The halo block indices are clamped in the index_maps, so mask by the
    # *intended* global position here; this also zeroes the stale tail of a
    # partial last 128-lane block.
    left = left_ref[...].astype(jnp.float32)
    left = jnp.where(t0 - _HALO + lane_h >= 0, left, 0.0)
    right = right_ref[...].astype(jnp.float32)
    right = jnp.where(t0 + t_tile + lane_h < t_total, right, 0.0)

    x = x_ref[...].astype(jnp.float32)
    if main_ragged:  # static: last main block is partial -> zero its tail
        lane_t = jax.lax.broadcasted_iota(jnp.int32, (1, t_tile), 1)
        x = jnp.where(t0 + lane_t < t_total, x, 0.0)

    # Assemble the haloed slab [left | x | right] with lane-aligned stores.
    # Kept in VMEM (not a register value) so the chunked loop below reads
    # uniform aligned windows and live vregs stay bounded; with ~32 VALU ops
    # per element the extra ld/st slots are not the binding unit.
    slab_ref[:, :_HALO] = left
    slab_ref[:, _HALO:_HALO + t_tile] = x
    slab_ref[:, _HALO + t_tile:] = right

    nz_taps = [(k, w) for k, w in enumerate(taps) if w != 0.0]  # skip 0-taps
    n_row = b_tile // row_chunk          # exact by construction
    n_col = t_tile // col_chunk          # exact by construction
    sub_w = col_chunk + 2 * _HALO

    # out[t] = sum_k taps[k] * slab[_HALO - pad + k + t]
    #        = sum_k taps[k] * roll(slab_chunk, pad - k)[:, _HALO + t]
    # Shifts run on the XLU; the windows are lane-aligned; taps are immediates.
    @pl.loop(0, n_row * n_col)
    def _(idx):
        if n_row == 1 and n_col == 1:
            ri, ci = 0, 0
        elif n_row == 1:
            ri, ci = 0, idx
        elif n_col == 1:
            ri, ci = idx, 0
        else:
            ri, ci = idx // n_col, idx % n_col
        r = ri * row_chunk
        c = ci * col_chunk
        if not isinstance(r, int):
            r = pl.multiple_of(r, row_chunk)
        if not isinstance(c, int):
            c = pl.multiple_of(c, col_chunk)

        sub = slab_ref[pl.ds(r, row_chunk), pl.ds(c, sub_w)]
        acc = jnp.zeros((row_chunk, col_chunk), jnp.float32)
        for k, w in nz_taps:
            shifted = pltpu.roll(sub, shift=(pad - k) % sub_w, axis=1)
            acc = acc + shifted[:, _HALO:_HALO + col_chunk] * w
        o_ref[pl.ds(r, row_chunk), pl.ds(c, col_chunk)] = acc.astype(o_ref.dtype)


# ----------------------------------------------------------------------------
# Wrapper: tiling choices + pallas_call.
# ----------------------------------------------------------------------------
def lti_radiation_filter(ex: jnp.ndarray, taps, *,
                         max_time_tile: int = 2048,
                         max_batch_tile: int = 128):
    """Apply the LTI radiation filter to ex of shape (B, T)."""
    assert ex.ndim == 2
    B, T = ex.shape
    L = len(taps)
    pad = L // 2
    assert pad <= _HALO, "num_zeros > 128 not supported by the 128-lane halo"
    assert max_time_tile % 128 == 0 and max_time_tile >= 128

    # Tiny-T fallback so every block shape stays <= the array dims.
    # TODO(synk): support T < 128 with a full-dim time block instead of padding.
    x = ex if T >= 128 else jnp.pad(ex, ((0, 0), (0, 128 - T)))
    Tw = x.shape[1]

    B_tile = _pick_batch_tile(B, max_batch_tile)
    T_tile = min(max_time_tile, (Tw // 128) * 128)   # multiple of 128, <= Tw
    nb = pl.cdiv(B, B_tile)
    nt = pl.cdiv(Tw, T_tile)
    n128 = pl.cdiv(Tw, 128)
    tile_blocks = T_tile // 128
    main_ragged = (Tw % T_tile) != 0

    row_chunk = _pick_row_chunk(B_tile)
    col_chunk = _pick_col_chunk(T_tile)

    kernel = functools.partial(
        _fir_kernel, taps=tuple(taps), pad=pad, t_total=Tw,
        main_ragged=main_ragged, row_chunk=row_chunk, col_chunk=col_chunk)

    def main_map(ib, it):
        return (ib, it)

    def left_map(ib, it):
        # 128-lane block immediately before this tile (clamped at the start).
        return (ib, jnp.maximum(it * tile_blocks - 1, 0))

    def right_map(ib, it):
        # 128-lane block immediately after this tile (clamped at the end).
        return (ib, jnp.minimum((it + 1) * tile_blocks, n128 - 1))

    out = pl.pallas_call(
        kernel,
        out_shape=jax.ShapeDtypeStruct((B, Tw), ex.dtype),
        grid=(nb, nt),
        in_specs=[
            pl.BlockSpec((B_tile, _HALO), left_map),    # left halo
            pl.BlockSpec((B_tile, T_tile), main_map),   # main tile
            pl.BlockSpec((B_tile, _HALO), right_map),   # right halo
        ],
        out_specs=pl.BlockSpec((B_tile, T_tile), main_map),
        scratch_shapes=[pltpu.VMEM((B_tile, T_tile + 2 * _HALO), jnp.float32)],
        compiler_params=pltpu.CompilerParams(
            dimension_semantics=("parallel", "parallel")),
    )(x, x, x)

    return out if Tw == T else out[:, :T]


# ----------------------------------------------------------------------------
# Plain-JAX reference (F.conv1d == cross-correlation, NCW layout).
# ----------------------------------------------------------------------------
def _reference(ex: jnp.ndarray, taps_arr: jnp.ndarray) -> jnp.ndarray:
    L = taps_arr.shape[0]
    pad = L // 2
    out = jax.lax.conv_general_dilated(
        ex[:, None, :].astype(jnp.float32),
        taps_arr[None, None, :].astype(jnp.float32),
        window_strides=(1,),
        padding=[(pad, pad)],
        dimension_numbers=("NCH", "OIH", "NCH"),
    )
    return out[:, 0, :].astype(ex.dtype)


if __name__ == "__main__":
    num_zeros = 8                       # L = 17, padding = 8
    taps = make_lti_radiation_taps(num_zeros)
    taps_arr = jnp.asarray(taps, dtype=jnp.float32)

    key = jax.random.PRNGKey(0)
    configs = [
        (2, 96),      # T < 128 fallback, single tile
        (4, 1000),    # ragged T, partial blocks, in-kernel masking
        (8, 4096),    # two time tiles (megacore-parallel time axis)
        (12, 1024),   # partial last batch block (B_tile=8, nb=2)
        (24, 2048),   # batch row-chunking (row_chunk=8, 3 row chunks)
    ]
    for (Bc, Tc) in configs:
        key, sub = jax.random.split(key)
        ex = jax.random.normal(sub, (Bc, Tc), dtype=jnp.float32)
        out = jax.block_until_ready(lti_radiation_filter(ex, taps))
        ref = _reference(ex, taps_arr)
        assert out.shape == (Bc, Tc), (out.shape, (Bc, Tc))
        assert jnp.allclose(out, ref, atol=1e-5, rtol=1e-5), f"mismatch at {(Bc, Tc)}"

    print("KERNEL_OK")
</pallas_src>

<mosaic_0001>
module attributes {stable_mosaic.version = 11 : i64} {
  func.func @_fir_kernel(%arg0: i32, %arg1: i32, %arg2: memref<2x128xf32, #tpu.memory_space<vmem>>, %arg3: memref<2x128xf32, #tpu.memory_space<vmem>>, %arg4: memref<2x128xf32, #tpu.memory_space<vmem>>, %arg5: memref<2x128xf32, #tpu.memory_space<vmem>>, %arg6: memref<2x384xf32, #tpu.memory_space<vmem>>) attributes {dimension_semantics = [#tpu.dimension_semantics<parallel>, #tpu.dimension_semantics<parallel>], iteration_bounds = array<i64: 1, 1>, scalar_prefetch = 0 : i64, scratch_operands = 1 : i64, tpu.core_type = #tpu.core_type<tc>, window_params = [{transform_indices = @transform_0, window_bounds = array<i64: 2, 128>}, {transform_indices = @transform_1, window_bounds = array<i64: 2, 128>}, {transform_indices = @transform_2, window_bounds = array<i64: 2, 128>}, {transform_indices = @transform_3, window_bounds = array<i64: 2, 128>}]} {
    %c128_i32 = arith.constant 128 : i32
    %0 = arith.muli %arg1, %c128_i32 : i32
    %1 = tpu.iota {dimensions = array<i32: 1>} : vector<1x128xi32>
    %c0 = arith.constant 0 : index
    %c0_0 = arith.constant 0 : index
    %2 = vector.load %arg2[%c0, %c0_0] : memref<2x128xf32, #tpu.memory_space<vmem>>, vector<2x128xf32>
    %c128_i32_1 = arith.constant 128 : i32
    %3 = arith.subi %0, %c128_i32_1 : i32
    %4 = vector.broadcast %3 : i32 to vector<1x128xi32>
    %5 = arith.addi %4, %1 : vector<1x128xi32>
    %c0_i32 = arith.constant 0 : i32
    %6 = vector.broadcast %c0_i32 : i32 to vector<1x128xi32>
    %7 = arith.cmpi sge, %5, %6 : vector<1x128xi32>
    %cst = arith.constant 0.000000e+00 : f32
    %8 = vector.shape_cast %7 : vector<1x128xi1> to vector<1x128xi1>
    %9 = vector.broadcast %8 : vector<1x128xi1> to vector<2x128xi1>
    %10 = vector.broadcast %cst : f32 to vector<2x128xf32>
    %11 = arith.select %9, %2, %10 : vector<2x128xi1>, vector<2x128xf32>
    %c0_2 = arith.constant 0 : index
    %c0_3 = arith.constant 0 : index
    %12 = vector.load %arg4[%c0_2, %c0_3] : memref<2x128xf32, #tpu.memory_space<vmem>>, vector<2x128xf32>
    %c128_i32_4 = arith.constant 128 : i32
    %13 = arith.addi %0, %c128_i32_4 : i32
    %14 = vector.broadcast %13 : i32 to vector<1x128xi32>
    %15 = arith.addi %14, %1 : vector<1x128xi32>
    %c128_i32_5 = arith.constant 128 : i32
    %16 = vector.broadcast %c128_i32_5 : i32 to vector<1x128xi32>
    %17 = arith.cmpi slt, %15, %16 : vector<1x128xi32>
    %cst_6 = arith.constant 0.000000e+00 : f32
    %18 = vector.shape_cast %17 : vector<1x128xi1> to vector<1x128xi1>
    %19 = vector.broadcast %18 : vector<1x128xi1> to vector<2x128xi1>
    %20 = vector.broadcast %cst_6 : f32 to vector<2x128xf32>
    %21 = arith.select %19, %12, %20 : vector<2x128xi1>, vector<2x128xf32>
    %c0_7 = arith.constant 0 : index
    %c0_8 = arith.constant 0 : index
    %22 = vector.load %arg3[%c0_7, %c0_8] : memref<2x128xf32, #tpu.memory_space<vmem>>, vector<2x128xf32>
    %c0_9 = arith.constant 0 : index
    %c0_10 = arith.constant 0 : index
    %23 = vector.load %arg6[%c0_9, %c0_10] : memref<2x384xf32, #tpu.memory_space<vmem>>, vector<2x128xf32>
    tpu.vector_store %arg6[%c0_9, %c0_10], %11 {strides = array<i32>} : memref<2x384xf32, #tpu.memory_space<vmem>>, vector<2x128xf32>,
    %c0_11 = arith.constant 0 : index
    %c128 = arith.constant 128 : index
    %24 = vector.load %arg6[%c0_11, %c128] : memref<2x384xf32, #tpu.memory_space<vmem>>, vector<2x128xf32>
    tpu.vector_store %arg6[%c0_11, %c128], %22 {strides = array<i32>} : memref<2x384xf32, #tpu.memory_space<vmem>>, vector<2x128xf32>,
    %c0_12 = arith.constant 0 : index
    %c256 = arith.constant 256 : index
    %25 = vector.load %arg6[%c0_12, %c256] : memref<2x384xf32, #tpu.memory_space<vmem>>, vector<2x128xf32>
    tpu.vector_store %arg6[%c0_12, %c256], %21 {strides = array<i32>} : memref<2x384xf32, #tpu.memory_space<vmem>>, vector<2x128xf32>,
    %c0_i32_13 = arith.constant 0 : i32
    %c0_14 = arith.constant 0 : index
    %c0_15 = arith.constant 0 : index
    %26 = vector.load %arg6[%c0_14, %c0_15] : memref<2x384xf32, #tpu.memory_space<vmem>>, vector<2x384xf32>
    %cst_16 = arith.constant 0.000000e+00 : f32
    %27 = vector.broadcast %cst_16 : f32 to vector<2x128xf32>
    %c8_i32 = arith.constant 8 : i32
    %28 = tpu.dynamic_rotate %26 by %c8_i32 dim 1 : vector<2x384xf32>, i32 -> vector<2x384xf32>
    %29 = vector.extract_strided_slice %28 {offsets = [0, 128], sizes = [2, 128], strides = [1, 1]} : vector<2x384xf32> to vector<2x128xf32>
    %cst_17 = arith.constant 0.00422048569 : f32
    %30 = vector.broadcast %cst_17 : f32 to vector<2x128xf32>
    %31 = arith.mulf %29, %30 : vector<2x128xf32>
    %32 = arith.addf %27, %31 : vector<2x128xf32>
    %c7_i32 = arith.constant 7 : i32
    %33 = tpu.dynamic_rotate %26 by %c7_i32 dim 1 : vector<2x384xf32>, i32 -> vector<2x384xf32>
    %34 = vector.extract_strided_slice %33 {offsets = [0, 128], sizes = [2, 128], strides = [1, 1]} : vector<2x384xf32> to vector<2x128xf32>
    %cst_18 = arith.constant -0.0186422206 : f32
    %35 = vector.broadcast %cst_18 : f32 to vector<2x128xf32>
    %36 = arith.mulf %34, %35 : vector<2x128xf32>
    %37 = arith.addf %32, %36 : vector<2x128xf32>
    %c6_i32 = arith.constant 6 : i32
    %38 = tpu.dynamic_rotate %26 by %c6_i32 dim 1 : vector<2x384xf32>, i32 -> vector<2x384xf32>
    %39 = vector.extract_strided_slice %38 {offsets = [0, 128], sizes = [2, 128], strides = [1, 1]} : vector<2x384xf32> to vector<2x128xf32>
    %cst_19 = arith.constant 0.04618847 : f32
    %40 = vector.broadcast %cst_19 : f32 to vector<2x128xf32>
    %41 = arith.mulf %39, %40 : vector<2x128xf32>
    %42 = arith.addf %37, %41 : vector<2x128xf32>
    %c5_i32 = arith.constant 5 : i32
    %43 = tpu.dynamic_rotate %26 by %c5_i32 dim 1 : vector<2x384xf32>, i32 -> vector<2x384xf32>
    %44 = vector.extract_strided_slice %43 {offsets = [0, 128], sizes = [2, 128], strides = [1, 1]} : vector<2x384xf32> to vector<2x128xf32>
    %cst_20 = arith.constant -0.0907731652 : f32
    %45 = vector.broadcast %cst_20 : f32 to vector<2x128xf32>
    %46 = arith.mulf %44, %45 : vector<2x128xf32>
    %47 = arith.addf %42, %46 : vector<2x128xf32>
    %c4_i32 = arith.constant 4 : i32
    %48 = tpu.dynamic_rotate %26 by %c4_i32 dim 1 : vector<2x384xf32>, i32 -> vector<2x384xf32>
    %49 = vector.extract_strided_slice %48 {offsets = [0, 128], sizes = [2, 128], strides = [1, 1]} : vector<2x384xf32> to vector<2x128xf32>
    %cst_21 = arith.constant 0.15920788 : f32
    %50 = vector.broadcast %cst_21 : f32 to vector<2x128xf32>
    %51 = arith.mulf %49, %50 : vector<2x128xf32>
    %52 = arith.addf %47, %51 : vector<2x128xf32>
    %c3_i32 = arith.constant 3 : i32
    %53 = tpu.dynamic_rotate %26 by %c3_i32 dim 1 : vector<2x384xf32>, i32 -> vector<2x384xf32>
    %54 = vector.extract_strided_slice %53 {offsets = [0, 128], sizes = [2, 128], strides = [1, 1]} : vector<2x384xf32> to vector<2x128xf32>
    %cst_22 = arith.constant -0.267105758 : f32
    %55 = vector.broadcast %cst_22 : f32 to vector<2x128xf32>
    %56 = arith.mulf %54, %55 : vector<2x128xf32>
    %57 = arith.addf %52, %56 : vector<2x128xf32>
    %c2_i32 = arith.constant 2 : i32
    %58 = tpu.dynamic_rotate %26 by %c2_i32 dim 1 : vector<2x384xf32>, i32 -> vector<2x384xf32>
    %59 = vector.extract_strided_slice %58 {offsets = [0, 128], sizes = [2, 128], strides = [1, 1]} : vector<2x384xf32> to vector<2x128xf32>
    %cst_23 = arith.constant 0.462554276 : f32
    %60 = vector.broadcast %cst_23 : f32 to vector<2x128xf32>
    %61 = arith.mulf %59, %60 : vector<2x128xf32>
    %62 = arith.addf %57, %61 : vector<2x128xf32>
    %c1_i32 = arith.constant 1 : i32
    %63 = tpu.dynamic_rotate %26 by %c1_i32 dim 1 : vector<2x384xf32>, i32 -> vector<2x384xf32>
    %64 = vector.extract_strided_slice %63 {offsets = [0, 128], sizes = [2, 128], strides = [1, 1]} : vector<2x384xf32> to vector<2x128xf32>
    %cst_24 = arith.constant -0.991486549 : f32
    %65 = vector.broadcast %cst_24 : f32 to vector<2x128xf32>
    %66 = arith.mulf %64, %65 : vector<2x128xf32>
    %67 = arith.addf %62, %66 : vector<2x128xf32>
    %c383_i32 = arith.constant 383 : i32
    %68 = tpu.dynamic_rotate %26 by %c383_i32 dim 1 : vector<2x384xf32>, i32 -> vector<2x384xf32>
    %69 = vector.extract_strided_slice %68 {offsets = [0, 128], sizes = [2, 128], strides = [1, 1]} : vector<2x384xf32> to vector<2x128xf32>
    %cst_25 = arith.constant 0.925108551 : f32
    %70 = vector.broadcast %cst_25 : f32 to vector<2x128xf32>
    %71 = arith.mulf %69, %70 : vector<2x128xf32>
    %72 = arith.addf %67, %71 : vector<2x128xf32>
    %c382_i32 = arith.constant 382 : i32
    %73 = tpu.dynamic_rotate %26 by %c382_i32 dim 1 : vector<2x384xf32>, i32 -> vector<2x384xf32>
    %74 = vector.extract_strided_slice %73 {offsets = [0, 128], sizes = [2, 128], strides = [1, 1]} : vector<2x384xf32> to vector<2x128xf32>
    %cst_26 = arith.constant -0.400658667 : f32
    %75 = vector.broadcast %cst_26 : f32 to vector<2x128xf32>
    %76 = arith.mulf %74, %75 : vector<2x128xf32>
    %77 = arith.addf %72, %76 : vector<2x128xf32>
    %c381_i32 = arith.constant 381 : i32
    %78 = tpu.dynamic_rotate %26 by %c381_i32 dim 1 : vector<2x384xf32>, i32 -> vector<2x384xf32>
    %79 = vector.extract_strided_slice %78 {offsets = [0, 128], sizes = [2, 128], strides = [1, 1]} : vector<2x384xf32> to vector<2x128xf32>
    %cst_27 = arith.constant 0.212277159 : f32
    %80 = vector.broadcast %cst_27 : f32 to vector<2x128xf32>
    %81 = arith.mulf %79, %80 : vector<2x128xf32>
    %82 = arith.addf %77, %81 : vector<2x128xf32>
    %c380_i32 = arith.constant 380 : i32
    %83 = tpu.dynamic_rotate %26 by %c380_i32 dim 1 : vector<2x384xf32>, i32 -> vector<2x384xf32>
    %84 = vector.extract_strided_slice %83 {offsets = [0, 128], sizes = [2, 128], strides = [1, 1]} : vector<2x384xf32> to vector<2x128xf32>
    %cst_28 = arith.constant -0.113466457 : f32
    %85 = vector.broadcast %cst_28 : f32 to vector<2x128xf32>
    %86 = arith.mulf %84, %85 : vector<2x128xf32>
    %87 = arith.addf %82, %86 : vector<2x128xf32>
    %c379_i32 = arith.constant 379 : i32
    %88 = tpu.dynamic_rotate %26 by %c379_i32 dim 1 : vector<2x384xf32>, i32 -> vector<2x384xf32>
    %89 = vector.extract_strided_slice %88 {offsets = [0, 128], sizes = [2, 128], strides = [1, 1]} : vector<2x384xf32> to vector<2x128xf32>
    %cst_29 = arith.constant 0.0554261655 : f32
    %90 = vector.broadcast %cst_29 : f32 to vector<2x128xf32>
    %91 = arith.mulf %89, %90 : vector<2x128xf32>
    %92 = arith.addf %87, %91 : vector<2x128xf32>
    %c378_i32 = arith.constant 378 : i32
    %93 = tpu.dynamic_rotate %26 by %c378_i32 dim 1 : vector<2x384xf32>, i32 -> vector<2x384xf32>
    %94 = vector.extract_strided_slice %93 {offsets = [0, 128], sizes = [2, 128], strides = [1, 1]} : vector<2x384xf32> to vector<2x128xf32>
    %cst_30 = arith.constant -0.0217492562 : f32
    %95 = vector.broadcast %cst_30 : f32 to vector<2x128xf32>
    %96 = arith.mulf %94, %95 : vector<2x128xf32>
    %97 = arith.addf %92, %96 : vector<2x128xf32>
    %c377_i32 = arith.constant 377 : i32
    %98 = tpu.dynamic_rotate %26 by %c377_i32 dim 1 : vector<2x384xf32>, i32 -> vector<2x384xf32>
    %99 = vector.extract_strided_slice %98 {offsets = [0, 128], sizes = [2, 128], strides = [1, 1]} : vector<2x384xf32> to vector<2x128xf32>
    %cst_31 = arith.constant 0.00482341228 : f32
    %100 = vector.broadcast %cst_31 : f32 to vector<2x128xf32>
    %101 = arith.mulf %99, %100 : vector<2x128xf32>
    %102 = arith.addf %97, %101 : vector<2x128xf32>
    %c0_32 = arith.constant 0 : index
    %c0_33 = arith.constant 0 : index
    %103 = vector.load %arg5[%c0_32, %c0_33] : memref<2x128xf32, #tpu.memory_space<vmem>>, vector<2x128xf32>
    tpu.vector_store %arg5[%c0_32, %c0_33], %102 {strides = array<i32>} : memref<2x128xf32, #tpu.memory_space<vmem>>, vector<2x128xf32>,
    return
  }
  func.func @transform_0(%arg0: i32, %arg1: i32) -> (i32, i32) {
    %c1_i32 = arith.constant 1 : i32
    %0 = arith.muli %arg1, %c1_i32 : i32
    %c1_i32_0 = arith.constant 1 : i32
    %1 = arith.subi %0, %c1_i32_0 : i32
    %c0_i32 = arith.constant 0 : i32
    %2 = arith.maxsi %1, %c0_i32 : i32
    %c0_i32_1 = arith.constant 0 : i32
    return %arg0, %2 : i32, i32
  }
  func.func @transform_1(%arg0: i32, %arg1: i32) -> (i32, i32) {
    %c0_i32 = arith.constant 0 : i32
    return %arg0, %arg1 : i32, i32
  }
  func.func @transform_2(%arg0: i32, %arg1: i32) -> (i32, i32) {
    %c1_i32 = arith.constant 1 : i32
    %0 = arith.addi %arg1, %c1_i32 : i32
    %c1_i32_0 = arith.constant 1 : i32
    %1 = arith.muli %0, %c1_i32_0 : i32
    %c0_i32 = arith.constant 0 : i32
    %2 = arith.minsi %1, %c0_i32 : i32
    %c0_i32_1 = arith.constant 0 : i32
    return %arg0, %2 : i32, i32
  }
  func.func @transform_3(%arg0: i32, %arg1: i32) -> (i32, i32) {
    %c0_i32 = arith.constant 0 : i32
    return %arg0, %arg1 : i32, i32
  }
}

</mosaic_0001>

<bundles_post_ra>
// kernel: tpu_custom_call.1
= control target key start
LH: loop header
LB: loop body
LE: loop exit
PB: predicated region body
PF: predicated region fallthrough
CT: control target
= control target key end

     0   :  { %8 = vsyncpa [#allocation4], 0  ;;  %s403_s0 = inlined_call_operand.hbm [shape: f32[2,128], index: 0, kind: input, shape index: {}]   ;;  %s404_s1 = inlined_call_operand.vmem [shape: f32[2,128], index: 1, kind: input, shape index: {}]   ;;  %s405_s2 = inlined_call_operand.vmem [shape: f32[2,128], index: 2, kind: input, shape index: {}]   ;;  %s406_s3 = inlined_call_operand.hbm [shape: f32[2,128], index: 3, kind: output, shape index: {}]  }
   0x1   :  { %9 = vsyncpa [#allocation5], 0  ;;  %s318_s12 = smov [#allocation3]   ;;  %s270_s16 = scalar_lea.hbm %s403_s0, 32 }
   0x2   :  { %s21_s13 = sshll.u32 %s318_s12, 4  ;;  %p271_p0 = scmp.ne.s32.totalorder %s403_s0, %s270_s16  ;;  %s22_s13 = int_to_ptr.vmem [resolvable:$true] %s21_s13 }
   0x3   :  { %p274_p1 = scmp.lt.u32.totalorder %s270_s16, %s403_s0 }
   0x5   :  { %p276_p2 = pnand %p274_p1, %p271_p0 }
   0x7   :  { %279 = shalt.err (!%p276_p2)
}
   0x8   :  { %s280_s2 = scalar_lea.vmem %s22_s13, 32  ;;  %p285_p4 = scmp.lt.s32.totalorder %s22_s13, %s22_s13 }
   0x9   :  { %p281_p3 = scmp.ne.s32.totalorder %s22_s13, %s280_s2  ;;  %p286_p5 = scmp.lt.s32.totalorder %s280_s2, %s280_s2 }
   0xb   :  { %p287_p6 = por %p286_p5, %p285_p4 }
   0xd   :  { %p288_p7 = pnand %p287_p6, %p281_p3 }
   0xf   :  { %291 = shalt.err (!%p288_p7)
}
  0x10   :  { %24 = dma.hbm_to_vmem [thread:$0]  %s403_s0, 32, %s22_s13, [#allocation4]  }
  0x11   :  { %314 = dma.done.wait [#allocation4], 32  }
  0x12   :  { %315 = vsyncadd [#allocation4], 4294967264  ;;  %v319_v0 = vmov 0.0   ;;  %v63_v1 = vlaneseq  ;;  %v320_v2 = vmov 1983009808   ;;  %s321_s0 = smov 7  }
  0x13   :  { %82 = vst [vmem:[#allocation2] sm:$0x3] %v319_v0  ;;  %84 = vst [vmem:[#allocation2 + $0x4] sm:$0x3] %v319_v0  ;;  %v88_v3 = vunpack.c.l.s4 %v320_v2  ;;  %v81_v4 = vld [vmem:[%s404_s1] sm:$0x3] }
  0x14   :  { %83 = vst [vmem:[#allocation2 + $0x2] sm:$0x3] %v81_v4  ;;  %v91_v6 = vshrl.u32 %v63_v1, 7  ;;  %s322_s25 = smov 8   ;;  %s323_s26 = smov 6   ;;  %v374_v19 = vand.u32 127, %v63_v1 }
  0x15   :  { %v89_v5 = vunpack.c.0.s8 %v88_v3  ;;  %s324_s27 = smov 5   ;;  %s325_s28 = smov 4  }
  0x16   :  { %s326_s1 = smov 3   ;;  %s327_s29 = smov 2   ;;  %vm109_vm0 = vcmp.lt.s32.totalorder %v374_v19, 7  ;;  %vm117_vm1 = vcmp.lt.s32.totalorder %v374_v19, 6  ;;  %vm101_vm2 = vcmp.lt.s32.totalorder %v374_v19, 8  ;;  %vm125_vm3 = vcmp.lt.s32.totalorder %v374_v19, 5 }
  0x17   :  { %v92_v7 = vsub.s32 %v89_v5, %v91_v6  ;;  %s328_s30 = smov 1   ;;  %s329_s4 = smov 127   ;;  %vm133_vm4 = vcmp.lt.s32.totalorder %v374_v19, 4  ;;  %vm141_vm5 = vcmp.lt.s32.totalorder %v374_v19, 3  ;;  %vm149_vm6 = vcmp.lt.s32.totalorder %v374_v19, 2 }
  0x18   :  { %s330_s5 = smov 126   ;;  %s331_s6 = smov 125   ;;  %vm157_vm7 = vcmp.lt.s32.totalorder %v374_v19, 1  ;;  %vm174_vm8 = vcmp.lt.s32.totalorder %v374_v19, 127  ;;  %vm182_vm9 = vcmp.lt.s32.totalorder %v374_v19, 126  ;;  %vm190_vm10 = vcmp.lt.s32.totalorder %v374_v19, 125 }
  0x19   :  { %s332_s7 = smov 124   ;;  %s333_s8 = smov 123   ;;  %vm198_vm11 = vcmp.lt.s32.totalorder %v374_v19, 124  ;;  %vm206_vm12 = vcmp.lt.s32.totalorder %v374_v19, 123  ;;  %vm214_vm13 = vcmp.lt.s32.totalorder %v374_v19, 122  ;;  %vm222_vm14 = vcmp.lt.s32.totalorder %v374_v19, 121 }
  0x1a   :  { %s334_s9 = smov 122   ;;  %s335_s10 = smov 121  }
  0x1b   :  { %v85_v8 = vld [vmem:[#allocation2] sm:$0x3f]  ;;  %s336_s11 = smov [#allocation6]  }
  0x1c   :  { %v93_v9 = vrot.slane %v85_v8, %v92_v7  ;;  %v161_v11 = vcombine.high %v85_v8, %v85_v8  ;;  %s233_s12 = sshll.u32 %s336_s11, 4  ;;  %s234_s12 = int_to_ptr.vmem [resolvable:$true] %s233_s12 }
  0x1d   :  { %s292_s13 = scalar_lea.vmem %s234_s12, 32  ;;  %p297_p9 = scmp.lt.s32.totalorder %s234_s12, %s234_s12 }
  0x1e   :  { %105 = vrot.lane.b32.xlu1 %v93_v9, %s321_s0  ;;  %v94_v10 = vcombine.high %v93_v9, %v93_v9  ;;  %97 = vrot.lane.b32.xlu0 %v93_v9, %s322_s25  ;;  %v168_v12 = vrot.slane %v161_v11, %v92_v7  ;;  %p293_p8 = scmp.ne.s32.totalorder %s234_s12, %s292_s13  ;;  %p298_p10 = scmp.lt.s32.totalorder %s292_s13, %s292_s13 }
  0x20   :  { %p299_p11 = por %p298_p10, %p297_p9 }
  0x22   :  { %113 = vrot.lane.b32.xlu0 %v93_v9, %s323_s26  ;;  %107 = vrot.lane.b32.xlu1 %v94_v10, %s321_s0  ;;  %p300_p12 = pnand %p299_p11, %p293_p8 }
  0x26   :  { %121 = vrot.lane.b32.xlu0 %v93_v9, %s324_s27  ;;  %115 = vrot.lane.b32.xlu1 %v94_v10, %s323_s26 }
  0x2a   :  { %129 = vrot.lane.b32.xlu0 %v93_v9, %s325_s28  ;;  %123 = vrot.lane.b32.xlu1 %v94_v10, %s324_s27 }
  0x2e   :  { %137 = vrot.lane.b32.xlu0 %v93_v9, %s326_s1  ;;  %131 = vrot.lane.b32.xlu1 %v94_v10, %s325_s28 }
  0x32   :  { %139 = vrot.lane.b32.xlu1 %v94_v10, %s326_s1  ;;  %99 = vrot.lane.b32.xlu0 %v94_v10, %s322_s25 }
  0x36   :  { %147 = vrot.lane.b32.xlu1 %v94_v10, %s327_s29  ;;  %145 = vrot.lane.b32.xlu0 %v93_v9, %s327_s29 }
  0x3a   :  { %155 = vrot.lane.b32.xlu1 %v94_v10, %s328_s30  ;;  %153 = vrot.lane.b32.xlu0 %v93_v9, %s328_s30 }
  0x3e   :  { %172 = vrot.lane.b32.xlu1 %v168_v12, %s329_s4  ;;  %170 = vrot.lane.b32.xlu0 %v94_v10, %s329_s4 }
  0x42   :  { %180 = vrot.lane.b32.xlu1 %v168_v12, %s330_s5  ;;  %178 = vrot.lane.b32.xlu0 %v94_v10, %s330_s5 }
  0x46   :  { %188 = vrot.lane.b32.xlu1 %v168_v12, %s331_s6  ;;  %186 = vrot.lane.b32.xlu0 %v94_v10, %s331_s6 }
  0x4a   :  { %196 = vrot.lane.b32.xlu1 %v168_v12, %s332_s7  ;;  %194 = vrot.lane.b32.xlu0 %v94_v10, %s332_s7 }
  0x4e   :  { %204 = vrot.lane.b32.xlu1 %v168_v12, %s333_s8  ;;  %202 = vrot.lane.b32.xlu0 %v94_v10, %s333_s8 }
  0x52   :  { %212 = vrot.lane.b32.xlu1 %v168_v12, %s334_s9  ;;  %210 = vrot.lane.b32.xlu0 %v94_v10, %s334_s9 }
  0x56   :  { %220 = vrot.lane.b32.xlu1 %v168_v12, %s335_s10  ;;  %218 = vrot.lane.b32.xlu0 %v94_v10, %s335_s10 }
  0x90   :  { %v106_v13 = vpop.permute.xlu1 %105  ;;  %v98_v14 = vpop.permute.xlu0 %97 }
  0x94   :  { %v114_v15 = vpop.permute.xlu0 %113  ;;  %v108_v16 = vpop.permute.xlu1 %107 }
  0x95   :  { %v110_v24 = vsel %vm109_vm0, %v106_v13, %v108_v16 }
  0x96   :  { %v111_v29 = vmul.f32 -0.01864222, %v110_v24 }
  0x98   :  { %v122_v17 = vpop.permute.xlu0 %121  ;;  %v116_v18 = vpop.permute.xlu1 %115 }
  0x99   :  { %v118_v27 = vsel %vm117_vm1, %v114_v15, %v116_v18 }
  0x9a   :  { %v119_v32 = vmul.f32 0.04618847, %v118_v27 }
  0x9c   :  { %v130_v20 = vpop.permute.xlu0 %129  ;;  %v124_v21 = vpop.permute.xlu1 %123 }
  0x9d   :  { %v126_v31 = vsel %vm125_vm3, %v122_v17, %v124_v21 }
  0x9e   :  { %v127_v37 = vmul.f32 -0.090773165, %v126_v31 }
  0xa0   :  { %v138_v22 = vpop.permute.xlu0 %137  ;;  %v132_v23 = vpop.permute.xlu1 %131 }
  0xa1   :  { %v134_v36 = vsel %vm133_vm4, %v130_v20, %v132_v23 }
  0xa2   :  { %v135_v39 = vmul.f32 0.15920788, %v134_v36 }
  0xa4   :  { %v140_v25 = vpop.permute.xlu1 %139  ;;  %v100_v26 = vpop.permute.xlu0 %99 }
  0xa5   :  { %v102_v28 = vsel %vm101_vm2, %v98_v14, %v100_v26  ;;  %v142_v43 = vsel %vm141_vm5, %v138_v22, %v140_v25 }
  0xa6   :  { %v103_v30 = vmul.f32 0.0042204857, %v102_v28  ;;  %v143_v45 = vmul.f32 -0.26710576, %v142_v43 }
  0xa8   :  { %v112_v33 = vadd.f32 %v111_v29, %v103_v30  ;;  %v148_v34 = vpop.permute.xlu1 %147  ;;  %v146_v35 = vpop.permute.xlu0 %145 }
  0xa9   :  { %v150_v48 = vsel %vm149_vm6, %v146_v35, %v148_v34 }
  0xaa   :  { %v120_v38 = vadd.f32 %v119_v32, %v112_v33  ;;  %v151_v50 = vmul.f32 0.46255428, %v150_v48 }
  0xac   :  { %v128_v40 = vadd.f32 %v127_v37, %v120_v38  ;;  %v156_v41 = vpop.permute.xlu1 %155  ;;  %v154_v42 = vpop.permute.xlu0 %153 }
  0xad   :  { %v158_v53 = vsel %vm157_vm7, %v154_v42, %v156_v41 }
  0xae   :  { %v136_v44 = vadd.f32 %v135_v39, %v128_v40  ;;  %v159_v55 = vmul.f32 -0.99148655, %v158_v53 }
  0xb0   :  { %v173_v46 = vpop.permute.xlu1 %172  ;;  %v171_v47 = vpop.permute.xlu0 %170  ;;  %v144_v49 = vadd.f32 %v143_v45, %v136_v44 }
  0xb1   :  { %v175_v58 = vsel %vm174_vm8, %v171_v47, %v173_v46 }
  0xb2   :  { %v152_v54 = vadd.f32 %v151_v50, %v144_v49  ;;  %v176_v61 = vmul.f32 0.92510855, %v175_v58 }
  0xb4   :  { %v181_v51 = vpop.permute.xlu1 %180  ;;  %v179_v52 = vpop.permute.xlu0 %178  ;;  %v160_v59 = vadd.f32 %v159_v55, %v152_v54 }
  0xb5   :  { %v183_v60 = vsel %vm182_vm9, %v179_v52, %v181_v51 }
  0xb6   :  { %v177_v1 = vadd.f32 %v176_v61, %v160_v59  ;;  %v184_v2 = vmul.f32 -0.40065867, %v183_v60 }
  0xb8   :  { %v189_v56 = vpop.permute.xlu1 %188  ;;  %v187_v57 = vpop.permute.xlu0 %186  ;;  %v185_v8 = vadd.f32 %v184_v2, %v177_v1 }
  0xb9   :  { %v191_v0 = vsel %vm190_vm10, %v187_v57, %v189_v56 }
  0xba   :  { %v192_v4 = vmul.f32 0.21227716, %v191_v0 }
  0xbc   :  { %v197_v62 = vpop.permute.xlu1 %196  ;;  %v195_v63 = vpop.permute.xlu0 %194  ;;  %v193_v10 = vadd.f32 %v192_v4, %v185_v8 }
  0xbd   :  { %v199_v3 = vsel %vm198_vm11, %v195_v63, %v197_v62 }
  0xbe   :  { %v200_v9 = vmul.f32 -0.11346646, %v199_v3 }
  0xc0   :  { %v205_v5 = vpop.permute.xlu1 %204  ;;  %v203_v6 = vpop.permute.xlu0 %202  ;;  %v201_v15 = vadd.f32 %v200_v9, %v193_v10 }
  0xc1   :  { %v207_v7 = vsel %vm206_vm12, %v203_v6, %v205_v5 }
  0xc2   :  { %v208_v11 = vmul.f32 0.055426165, %v207_v7 }
  0xc4   :  { %v213_v12 = vpop.permute.xlu1 %212  ;;  %v211_v13 = vpop.permute.xlu0 %210  ;;  %v209_v17 = vadd.f32 %v208_v11, %v201_v15 }
  0xc5   :  { %v215_v14 = vsel %vm214_vm13, %v211_v13, %v213_v12 }
  0xc6   :  { %v216_v16 = vmul.f32 -0.021749256, %v215_v14 }
  0xc8   :  { %v221_v18 = vpop.permute.xlu1 %220  ;;  %v219_v20 = vpop.permute.xlu0 %218  ;;  %v217_v22 = vadd.f32 %v216_v16, %v209_v17 }
  0xc9   :  { %v223_v21 = vsel %vm222_vm14, %v219_v20, %v221_v18 }
  0xca   :  { %v224_v23 = vmul.f32 0.0048234123, %v223_v21 }
  0xcc   :  { %v225_v24 = vadd.f32 %v224_v23, %v217_v22 }
  0xce   :  { %226 = vst [vmem:[#allocation6] sm:$0x3] %v225_v24 }
  0xcf   :  { %303 = shalt.err (!%p300_p12)
}
  0xd0   :  { %s304_s16 = scalar_lea.hbm %s406_s3, 32 }
  0xd1   :  { %p305_p13 = scmp.ne.s32.totalorder %s406_s3, %s304_s16  ;;  %p308_p0 = scmp.lt.u32.totalorder %s304_s16, %s406_s3 }
  0xd3   :  { %p310_p1 = pnand %p308_p0, %p305_p13 }
  0xd5   :  { %313 = shalt.err (!%p310_p1)
}
  0xd6   :  { %236 = dma.vmem_to_hbm [thread:$0]  %s234_s12, 32, %s406_s3, [#allocation5]  }
  0xd7   :  { %316 = dma.done.wait [#allocation5], 32  }
  0xd8   :  { %317 = vsyncadd [#allocation5], 4294967264 }
  0xd9   :  { %240 = vsyncpa [#allocation4], 1 }
  0xda   :  { %241 = vsyncpa [#allocation5], 1 }

</bundles_post_ra>
